<compile_context>
chip_gen: v5e
topology: v5e:2x2
jax: 0.10.0
libtpu: 0.0.40
codegen_flags: <defaults>
</compile_context>

<pallas_src>
import functools

import jax
import jax.numpy as jnp
from jax.experimental import pallas as pl
from jax.experimental.pallas import tpu as pltpu


# --------------------------------------------------------------------------- #
# Kernels
# --------------------------------------------------------------------------- #
def _adj_minmax_kernel(adj_ref, amax_ref, amin_ref, *, n_src):
    """Per-destination-column running max / min of adj over source nodes m.

    adj_ref:  (1, tm, tn)  tile of adj[b, m_tile, n_tile]   (native dtype)
    amax_ref: (1, 1,  tn)  running column max (f32, revisited across k)
    amin_ref: (1, 1,  tn)  running column min (f32, revisited across k)
    """
    k = pl.program_id(2)
    a = adj_ref[0]                                        # (tm, tn)
    tm = a.shape[0]
    if n_src % tm != 0:
        # Static-rare path: the last m-tile overhangs the array edge.  Replace
        # the padded tail rows with row 0 of the tile (doesn't change max/min).
        valid = jnp.minimum(tm, n_src - k * tm)
        rows = jax.lax.broadcasted_iota(jnp.int32, a.shape, 0)
        a = jnp.where(rows < valid, a, a[0:1, :])

    # Reduce in native dtype; cast only the tiny (1, tn) results.
    row_max = jnp.max(a, axis=0, keepdims=True).astype(jnp.float32)
    row_min = jnp.min(a, axis=0, keepdims=True).astype(jnp.float32)

    @pl.when(k == 0)
    def _():
        amax_ref[0] = row_max
        amin_ref[0] = row_min

    @pl.when(k != 0)
    def _():
        amax_ref[0] = jnp.maximum(amax_ref[0], row_max)
        amin_ref[0] = jnp.minimum(amin_ref[0], row_min)


def _combine_kernel(x_ref, amax_ref, amin_ref, out_ref):
    """pooled[n, d] = max(x[n, d] * amax[n], x[n, d] * amin[n]).

    x_ref: (1, tn, D); amax/amin: (1, tn, 1) f32; out: (1, tn, D)
    """
    x = x_ref[0].astype(jnp.float32)                      # (tn, D)
    hi = amax_ref[0]                                      # (tn, 1)
    lo = amin_ref[0]
    out_ref[0] = jnp.maximum(x * hi, x * lo).astype(out_ref.dtype)


# --------------------------------------------------------------------------- #
# Tile / VMEM sizing
# --------------------------------------------------------------------------- #
def _round_down(x, m):
    return (x // m) * m


def _vmem_params():
    """Generation-aware budget for the pipelined working set + scoped limit."""
    try:
        cap = int(pltpu.get_tpu_info().vmem_capacity_bytes)  # 64 MiB v7x, 128 MiB v5e/v6e
    except Exception:
        cap = 64 << 20                                        # conservative fallback
    budget = min(24 << 20, max(8 << 20, cap // 3))
    limit = max(16 << 20, min((cap * 3) // 4, 2 * budget))
    return budget, limit


def _pick_adj_tiles(N, adj_isz, budget_bytes, prefer_split):
    """(tm, tn) for the stage-1 adj block (1, tm, tn)."""
    per_buf = max(budget_bytes // 2, 1)        # adj block is double-buffered
    # n (destination) axis on lanes: multiple of 128 (edge overhang is fine,
    # per-column results are independent and stores are masked), else full N.
    if N < 128:
        tn = N
    else:
        tn = min(512, _round_down(N, 128))
        if prefer_split and tn >= N and N >= 256:
            tn = max(128, _round_down(N // 2, 128))   # >=2 n-tiles for megacore
    # m (source, reduced) axis on sublanes: any multiple of 8 (the kernel masks
    # an overhanging last tile), else full N when N < 8.
    max_rows = max(8, per_buf // max(tn * adj_isz, 1))
    tm = min(_round_down(N, 8), _round_down(max_rows, 8))
    if tm == 0:                                # N < 8
        tm = N
    return tm, tn


def _pick_combine_tile(N, D, in_isz, out_isz, budget_bytes, prefer_split):
    """n-tile for stage 2; budgets features + output + lane-padded vectors."""
    if N <= 8:
        return N
    # Double-buffered feature and output blocks, plus the (tn, 1) amax/amin
    # blocks whose single lane pads to a full 128-lane row in VMEM.
    per_row = 2 * D * (in_isz + out_isz) + 2 * 2 * 128 * 4
    max_rows = max(8, budget_bytes // per_row)
    tn = max(8, min(_round_down(N, 8), _round_down(max_rows, 8), 4096))
    if prefer_split and tn >= N and N >= 16:
        tn = max(8, _round_down(N // 2, 8))
    return tn


# --------------------------------------------------------------------------- #
# Wrapper
# --------------------------------------------------------------------------- #
def max_pooling(inputs, adj):
    """inputs: (B, N, D); adj: (B, N, N)  ->  (B, N, D)."""
    B, N, D = inputs.shape
    assert adj.shape == (B, N, N)
    out_dtype = jnp.result_type(inputs.dtype, adj.dtype)

    budget, vmem_limit = _vmem_params()
    prefer_split = (B == 1)

    # ---- Stage 1: per-column max / min of adj over source nodes m ---------- #
    adj_isz = jnp.dtype(adj.dtype).itemsize
    tm, tn_a = _pick_adj_tiles(N, adj_isz, budget, prefer_split)
    amax, amin = pl.pallas_call(
        functools.partial(_adj_minmax_kernel, n_src=N),
        out_shape=(jax.ShapeDtypeStruct((B, 1, N), jnp.float32),
                   jax.ShapeDtypeStruct((B, 1, N), jnp.float32)),
        grid=(B, pl.cdiv(N, tn_a), pl.cdiv(N, tm)),
        in_specs=[pl.BlockSpec((1, tm, tn_a), lambda b, i, k: (b, k, i))],
        out_specs=(pl.BlockSpec((1, 1, tn_a), lambda b, i, k: (b, 0, i)),
                   pl.BlockSpec((1, 1, tn_a), lambda b, i, k: (b, 0, i))),
        compiler_params=pltpu.CompilerParams(
            dimension_semantics=("parallel", "parallel", "arbitrary"),
            vmem_limit_bytes=vmem_limit),
    )(adj)

    # (B, 1, N) -> (B, N, 1): identical row-major order, pure layout plumbing.
    amax = amax.reshape(B, N, 1)
    amin = amin.reshape(B, N, 1)

    # ---- Stage 2: pooled = max(x * amax, x * amin) -------------------------- #
    # TODO(synk): for D < 128 the output lane width is < 128 (masked stores);
    # folding 128//D nodes per row would need an in-kernel lane repeat of the
    # per-node scalars, so the inefficiency is accepted for tiny-D cases.
    tn_b = _pick_combine_tile(N, D, jnp.dtype(inputs.dtype).itemsize,
                              jnp.dtype(out_dtype).itemsize, budget, prefer_split)
    return pl.pallas_call(
        _combine_kernel,
        out_shape=jax.ShapeDtypeStruct((B, N, D), out_dtype),
        grid=(B, pl.cdiv(N, tn_b)),
        in_specs=[pl.BlockSpec((1, tn_b, D), lambda b, i: (b, i, 0)),
                  pl.BlockSpec((1, tn_b, 1), lambda b, i: (b, i, 0)),
                  pl.BlockSpec((1, tn_b, 1), lambda b, i: (b, i, 0))],
        out_specs=pl.BlockSpec((1, tn_b, D), lambda b, i: (b, i, 0)),
        compiler_params=pltpu.CompilerParams(
            dimension_semantics=("parallel", "parallel"),
            vmem_limit_bytes=vmem_limit),
    )(inputs, amax, amin)


# --------------------------------------------------------------------------- #
# Self-test
# --------------------------------------------------------------------------- #
if __name__ == "__main__":
    def _reference(inputs, adj):
        # plain-JAX reference with identical semantics to the PyTorch module
        return jnp.max(inputs[:, None, :, :] * adj[:, :, :, None], axis=1)

    key = jax.random.PRNGKey(0)
    # Primary small shape + cases exercising non-128/8-aligned N, the masked
    # m-tail path, lane tiling and the B==1 megacore split.
    shapes = [(2, 8, 32), (1, 72, 32), (1, 20, 32), (1, 256, 32)]
    for (B, N, D) in shapes:
        key, k1, k2 = jax.random.split(key, 3)
        inputs = jax.random.normal(k1, (B, N, D), dtype=jnp.float32)
        adj = (jax.random.uniform(k2, (B, N, N)) < 0.5).astype(jnp.float32)

        out = jax.block_until_ready(max_pooling(inputs, adj))
        ref = _reference(inputs, adj)

        assert out.shape == (B, N, D)
        assert bool(jnp.allclose(out, ref, atol=1e-6, rtol=1e-6)), (B, N, D)

    print("KERNEL_OK")
</pallas_src>

<mosaic_0001>
module attributes {stable_mosaic.version = 11 : i64} {
  func.func @_adj_minmax_kernel(%arg0: i32, %arg1: i32, %arg2: i32, %arg3: memref<1x8x8xf32, #tpu.memory_space<vmem>>, %arg4: memref<1x1x8xf32, #tpu.memory_space<vmem>>, %arg5: memref<1x1x8xf32, #tpu.memory_space<vmem>>) attributes {dimension_semantics = [#tpu.dimension_semantics<parallel>, #tpu.dimension_semantics<parallel>, #tpu.dimension_semantics<arbitrary>], iteration_bounds = array<i64: 2, 1, 1>, scalar_prefetch = 0 : i64, scratch_operands = 0 : i64, tpu.core_type = #tpu.core_type<tc>, window_params = [{transform_indices = @transform_0, window_bounds = array<i64: 1, 8, 8>}, {transform_indices = @transform_1, window_bounds = array<i64: 1, 1, 8>}, {transform_indices = @transform_2, window_bounds = array<i64: 1, 1, 8>}]} {
    %c0 = arith.constant 0 : index
    %c0_0 = arith.constant 0 : index
    %c0_1 = arith.constant 0 : index
    %0 = vector.load %arg3[%c0, %c0_0, %c0_1] : memref<1x8x8xf32, #tpu.memory_space<vmem>>, vector<1x8x8xf32>
    %1 = vector.shape_cast %0 : vector<1x8x8xf32> to vector<8x8xf32>
    %cst = arith.constant dense<0xFF800000> : vector<8xf32>
    %2 = vector.multi_reduction <maximumf>, %1, %cst [0] : vector<8x8xf32> to vector<8xf32>
    %3 = vector.shape_cast %2 : vector<8xf32> to vector<1x8xf32>
    %cst_2 = arith.constant dense<0x7F800000> : vector<8xf32>
    %4 = vector.multi_reduction <minimumf>, %1, %cst_2 [0] : vector<8x8xf32> to vector<8xf32>
    %5 = vector.shape_cast %4 : vector<8xf32> to vector<1x8xf32>
    %c0_i32 = arith.constant 0 : i32
    %6 = arith.cmpi eq, %arg2, %c0_i32 : i32
    %7 = arith.extui %6 : i1 to i32
    %c0_i32_3 = arith.constant 0 : i32
    %8 = arith.cmpi ne, %7, %c0_i32_3 : i32
    scf.if %8 {
      %c0_6 = arith.constant 0 : index
      %c0_7 = arith.constant 0 : index
      %c0_8 = arith.constant 0 : index
      %12 = vector.load %arg4[%c0_6, %c0_7, %c0_8] : memref<1x1x8xf32, #tpu.memory_space<vmem>>, vector<1x1x8xf32>
      %13 = vector.shape_cast %12 : vector<1x1x8xf32> to vector<1x8xf32>
      %14 = vector.shape_cast %3 : vector<1x8xf32> to vector<1x1x8xf32>
      tpu.vector_store %arg4[%c0_6, %c0_7, %c0_8], %14 {strides = array<i32>} : memref<1x1x8xf32, #tpu.memory_space<vmem>>, vector<1x1x8xf32>,
      %c0_9 = arith.constant 0 : index
      %c0_10 = arith.constant 0 : index
      %c0_11 = arith.constant 0 : index
      %15 = vector.load %arg5[%c0_9, %c0_10, %c0_11] : memref<1x1x8xf32, #tpu.memory_space<vmem>>, vector<1x1x8xf32>
      %16 = vector.shape_cast %15 : vector<1x1x8xf32> to vector<1x8xf32>
      %17 = vector.shape_cast %5 : vector<1x8xf32> to vector<1x1x8xf32>
      tpu.vector_store %arg5[%c0_9, %c0_10, %c0_11], %17 {strides = array<i32>} : memref<1x1x8xf32, #tpu.memory_space<vmem>>, vector<1x1x8xf32>,
    } else {
    }
    %c0_i32_4 = arith.constant 0 : i32
    %9 = arith.cmpi ne, %arg2, %c0_i32_4 : i32
    %10 = arith.extui %9 : i1 to i32
    %c0_i32_5 = arith.constant 0 : i32
    %11 = arith.cmpi ne, %10, %c0_i32_5 : i32
    scf.if %11 {
      %c0_6 = arith.constant 0 : index
      %c0_7 = arith.constant 0 : index
      %c0_8 = arith.constant 0 : index
      %12 = vector.load %arg4[%c0_6, %c0_7, %c0_8] : memref<1x1x8xf32, #tpu.memory_space<vmem>>, vector<1x1x8xf32>
      %13 = vector.shape_cast %12 : vector<1x1x8xf32> to vector<1x8xf32>
      %14 = arith.maximumf %13, %3 : vector<1x8xf32>
      %c0_9 = arith.constant 0 : index
      %c0_10 = arith.constant 0 : index
      %c0_11 = arith.constant 0 : index
      %15 = vector.load %arg4[%c0_9, %c0_10, %c0_11] : memref<1x1x8xf32, #tpu.memory_space<vmem>>, vector<1x1x8xf32>
      %16 = vector.shape_cast %15 : vector<1x1x8xf32> to vector<1x8xf32>
      %17 = vector.shape_cast %14 : vector<1x8xf32> to vector<1x1x8xf32>
      tpu.vector_store %arg4[%c0_9, %c0_10, %c0_11], %17 {strides = array<i32>} : memref<1x1x8xf32, #tpu.memory_space<vmem>>, vector<1x1x8xf32>,
      %c0_12 = arith.constant 0 : index
      %c0_13 = arith.constant 0 : index
      %c0_14 = arith.constant 0 : index
      %18 = vector.load %arg5[%c0_12, %c0_13, %c0_14] : memref<1x1x8xf32, #tpu.memory_space<vmem>>, vector<1x1x8xf32>
      %19 = vector.shape_cast %18 : vector<1x1x8xf32> to vector<1x8xf32>
      %20 = arith.minimumf %19, %5 : vector<1x8xf32>
      %c0_15 = arith.constant 0 : index
      %c0_16 = arith.constant 0 : index
      %c0_17 = arith.constant 0 : index
      %21 = vector.load %arg5[%c0_15, %c0_16, %c0_17] : memref<1x1x8xf32, #tpu.memory_space<vmem>>, vector<1x1x8xf32>
      %22 = vector.shape_cast %21 : vector<1x1x8xf32> to vector<1x8xf32>
      %23 = vector.shape_cast %20 : vector<1x8xf32> to vector<1x1x8xf32>
      tpu.vector_store %arg5[%c0_15, %c0_16, %c0_17], %23 {strides = array<i32>} : memref<1x1x8xf32, #tpu.memory_space<vmem>>, vector<1x1x8xf32>,
    } else {
    }
    return
  }
  func.func @transform_0(%arg0: i32, %arg1: i32, %arg2: i32) -> (i32, i32, i32) {
    %c0_i32 = arith.constant 0 : i32
    return %arg0, %arg2, %arg1 : i32, i32, i32
  }
  func.func @transform_1(%arg0: i32, %arg1: i32, %arg2: i32) -> (i32, i32, i32) {
    %c0_i32 = arith.constant 0 : i32
    %c0_i32_0 = arith.constant 0 : i32
    return %arg0, %c0_i32, %arg1 : i32, i32, i32
  }
  func.func @transform_2(%arg0: i32, %arg1: i32, %arg2: i32) -> (i32, i32, i32) {
    %c0_i32 = arith.constant 0 : i32
    %c0_i32_0 = arith.constant 0 : i32
    return %arg0, %c0_i32, %arg1 : i32, i32, i32
  }
}

</mosaic_0001>

<bundles_post_ra>
// kernel: tpu_custom_call.1
= control target key start
LH: loop header
LB: loop body
LE: loop exit
PB: predicated region body
PF: predicated region fallthrough
CT: control target
= control target key end

     0   :  { %8 = vsyncpa [#allocation3], 0  ;;  %s764_s0 = inlined_call_operand.hbm [shape: f32[2,8,8], index: 0, kind: input, shape index: {}]   ;;  %s765_s1 = inlined_call_operand.hbm [shape: f32[2,1,8], index: 1, kind: output, shape index: {0}]   ;;  %s766_s2 = inlined_call_operand.hbm [shape: f32[2,1,8], index: 2, kind: output, shape index: {1}]  }
   0x1   :  { %10 = vsyncpa [#allocation3 + $0x1], 0 }
   0x2   :  { %11 = vsyncpa [#allocation4], 0 }
   0x3   :  { %13 = vsyncpa [#allocation4 + $0x1], 0 }
   0x4   :  { %14 = vsyncpa [#allocation7], 0 }
   0x5   :  { %16 = vsyncpa [#allocation7 + $0x1], 0  ;;  %s612_s9 = smov 0   ;;  %s614_s10 = smov 0  }
   0x6   :  { %s616_s11 = smov 0   ;;  %s618_s12 = smov 0  }
   0x7   :  { %s620_s13 = smov 0   ;;  %s622_s14 = smov 0  }
   0x8 LB: > { %s374_s15 = sadd.s32 4294967295, %s595_s14   ;;  %s375_s16 = sadd.s32 4294967294, %s595_s14   ;;  %s595_s14 = sphi %s622_s14, %s22_s14   ;;  %s591_s13 = sphi %s620_s13, %s775_s13   ;;  %s587_s12 = sphi %s618_s12, %s774_s12   ;;  %s583_s11 = sphi %s616_s11, %s773_s11   ;;  %s579_s10 = sphi %s614_s10, %s772_s10   ;;  %s575_s9 = sphi %s612_s9, %s771_s9  }
   0x9   : > { %s41_s17 = sadd.s32 1, %s591_s13  ;;  %s52_s18 = sadd.s32 1, %s583_s11 }
   0xa   : > { %p43_p0 = scmp.ge.s32.totalorder %s41_s17, 2  ;;  %p59_p1 = scmp.ne.s32.totalorder %s583_s11, %s579_s10 }
   0xb   : > { %p60_p2 = scmp.eq.s32.totalorder %s595_s14, 0  ;;  %p65_p3 = scmp.ne.s32.totalorder %s579_s10, %s575_s9 }
   0xc   : > { %s777_s17 = smov (%p43_p0, %s41_s17), 0  ;;  %p66_p5 = scmp.eq.s32.totalorder %s374_s15, 0 }
   0xd   : > { %p653_p4 = por %p60_p2, %p59_p1  ;;  %s45_s20 = ssub.s32 %s591_s13, %s777_s17 }
   0xe   : > { %p91_p6 = scmp.eq.s32.totalorder %s374_s15, 1  ;;  %p50_p7 = scmp.eq.s32.totalorder %s45_s20, 0 }
   0xf   : > { %p659_p8 = por %p66_p5, %p65_p3  ;;  %p97_p10 = scmp.eq.s32.totalorder %s375_s16, 1 }
  0x10   : > { %p663_p9 = por %p91_p6, %p59_p1  ;;  %p377_p12 = scmp.ge.s32.totalorder %s595_s14, 2 }
  0x11   : > { %s668_s23 = scalar_select %p50_p7, %s583_s11, %s52_s18  }
  0x12   : > { %p670_p11 = por %p97_p10, %p65_p3  ;;  %p401_p13 = scmp.lt.s32.totalorder %s595_s14, 2 }
  0x13   : > { %s145_s25 = sand.u32 1, %s583_s11   ;;  %s379_s27 = sshll.u32 %s591_s13, 3 }
  0x14   : > { %s378_s26 = sshll.u32 %s145_s25, 3  ;;  %s155_s30 = scalar_lea.hbm %s764_s0, %s379_s27 }
  0x15   : > { %s149_s3 = scalar_lea.vmem [#allocation2], %s378_s26  ;;  %s157_s5 = sshll.u32 %s155_s30, 4  ;;  %s158_s5 = int_to_ptr.hbm [resolvable:$true] %s157_s5 }
  0x16   : > { %s159_s4 = sshll.u32 %s149_s3, 4  ;;  %p391_p0 = pnand %p401_p13, %p653_p4  ;;  %s160_s4 = int_to_ptr.vmem [resolvable:$true] %s159_s4 }
  0x17   : > { %p380_p1 = scmp.ge.s32.totalorder %s595_s14, 1  ;;  %p164_p2 = scmp.lt.s32.totalorder %s595_s14, 3 }
  0x18   : > { %s146_s6 = scalar_lea.sflag [#allocation3], %s145_s25 }
  0x19   : > { %393 = dma.hbm_to_vmem [thread:$0]  (!%p391_p0), %s158_s5, 128, %s160_s4, %s146_s6  }
  0x1a   : > { %p165_p3 = pnand %p380_p1, %p164_p2 }
  0x1b   : > { %s686_s7 = sand.u32 (!%p165_p3), 1, %s579_s10  }
  0x1c   : > { %168 = sbr.rel (%p165_p3) target bundleno = 64 (0x40), region = 24  ;;  %s381_s8 = sshll.u32 (!%p165_p3), %s686_s7, 3 }
  0x1d   : > { %s171_s15 = scalar_lea.sflag (!%p165_p3), [#allocation3], %s686_s7  ;;  %s174_s16 = scalar_lea.vmem (!%p165_p3), [#allocation2], %s381_s8 }
  0x21   : > { %562 = dma.done.wait (%p659_p8), %s171_s15, 128  }
  0x22   : > { %564 = vsyncadd (%p659_p8), %s171_s15, 4294967168  ;;  %vm200_vm0 = vcmask 64512   ;;  %v199_v0 = vld [vmem:[%s174_s16] sm:$0xff]  ;;  %s247_s20 = scalar_lea.hbm %s765_s1, %s587_s12  ;;  %s261_s26 = scalar_lea.hbm %s766_s2, %s587_s12  ;;  %vm219_vm1 = vcmask 57344  }
  0x23   : > { %v201_v1 = vsel %vm200_vm0, %v199_v0, -inf  ;;  %v208_v2 = vsel %vm200_vm0, %v199_v0, inf  ;;  %s192_s27 = scalar_lea.vmem [#allocation5], %s686_s7  ;;  %s198_s29 = scalar_lea.vmem [#allocation6], %s686_s7 }
  0x24   : > { %v202_v3 = vrot.slane %v201_v1, 4  ;;  %v209_v4 = vrot.slane %v208_v2, 4  ;;  %s703_s28 = sshll.u32 %s192_s27, 4  ;;  %s706_s30 = sshll.u32 %s198_s29, 4  ;;  %s250_s28 = int_to_ptr.vmem [resolvable:$true] %s703_s28  ;;  %s264_s30 = int_to_ptr.vmem [resolvable:$true] %s706_s30 }
  0x25   : > { %s251_s3 = sshll.u32 %s247_s20, 4  ;;  %s708_s4 = sshll.u32 %s261_s26, 4  ;;  %s252_s3 = int_to_ptr.hbm [resolvable:$true] %s251_s3  ;;  %s266_s4 = int_to_ptr.hbm [resolvable:$true] %s708_s4 }
  0x26   : > { %v203_v5 = vmax.f32 %v201_v1, %v202_v3  ;;  %v210_v6 = vmin.f32 %v208_v2, %v209_v4  ;;  %s234_s12 = scalar_lea.sflag [#allocation4], %s686_s7  ;;  %s495_s5 = sshra.s32 %s252_s3, 4  ;;  %s496_s5 = int_to_ptr.hbm [resolvable:$true] %s495_s5 }
  0x27   : > { %s497_s6 = scalar_lea.hbm %s496_s5, 1  ;;  %s501_s16 = scalar_lea.hbm %s765_s1, 2 }
  0x28   : > { %v204_v7 = vrot.slane %v203_v5, 2  ;;  %v211_v8 = vrot.slane %v210_v6, 2  ;;  %p498_p4 = scmp.ne.s32.totalorder %s496_s5, %s497_s6  ;;  %p502_p7 = scmp.lt.s32.totalorder %s496_s5, %s765_s1 }
  0x29   : > { %p503_p8 = scmp.lt.s32.totalorder %s501_s16, %s497_s6 }
  0x2a   : > { %v205_v9 = vmax.f32 %v203_v5, %v204_v7  ;;  %v212_v10 = vmin.f32 %v210_v6, %v211_v8  ;;  %p499_p5 = pnand %p498_p4, %p663_p9 }
  0x2b   : > { %p504_p10 = por %p503_p8, %p502_p7 }
  0x2c   : > { %v206_v11 = vrot.slane %v205_v9, 1  ;;  %v213_v12 = vrot.slane %v212_v10, 1  ;;  %p500_p6 = pneg %p499_p5 }
  0x2e   : > { %v207_v13 = vmax.f32 %v205_v9, %v206_v11  ;;  %v214_v14 = vmin.f32 %v212_v10, %v213_v12  ;;  %p505_p13 = pnand %p504_p10, %p500_p6 }
  0x30   : > { %220 = vst.msk [vmem:[%s192_s27] sm:$0x1] %vm219_vm1, %v207_v13 }
  0x31   : > { %221 = vst.msk [vmem:[%s198_s29] sm:$0x1] %vm219_vm1, %v214_v14 }
  0x32   : > { %508 = shalt.err (!%p505_p13)
}
  0x33   : > { %386 = dma.vmem_to_hbm [thread:$0]  (%p663_p9), %s250_s28, 16, %s252_s3, %s234_s12  }
  0x34   : > { %s238_s20 = scalar_lea.sflag [#allocation7], %s686_s7  ;;  %s523_s21 = sshra.s32 %s266_s4, 4  ;;  %s524_s21 = int_to_ptr.hbm [resolvable:$true] %s523_s21 }
  0x35   : > { %s525_s25 = scalar_lea.hbm %s524_s21, 1  ;;  %s529_s29 = scalar_lea.hbm %s766_s2, 2 }
  0x36   : > { %p526_p0 = scmp.ne.s32.totalorder %s524_s21, %s525_s25  ;;  %p530_p3 = scmp.lt.s32.totalorder %s524_s21, %s766_s2 }
  0x37   : > { %p531_p4 = scmp.lt.s32.totalorder %s529_s29, %s525_s25 }
  0x38   : > { %p527_p1 = pnand %p526_p0, %p663_p9 }
  0x39   : > { %p532_p5 = por %p531_p4, %p530_p3 }
  0x3a   : > { %p528_p2 = pneg %p527_p1 }
  0x3c   : > { %p533_p6 = pnand %p532_p5, %p528_p2 }
  0x3e   : > { %536 = shalt.err (!%p533_p6)
}
  0x3f   : > { %387 = dma.vmem_to_hbm [thread:$0]  (%p663_p9), %s264_s30, 16, %s266_s4, %s238_s20  }
  0x40 PF: > { %s277_s7 = sand.u32 1, %s575_s9   ;;  %p395_p7 = pnand %p377_p12, %p670_p11 }
  0x41   : > { %s278_s28 = scalar_lea.sflag [#allocation4], %s277_s7 }
  0x42   : > { %p396_p8 = pneg %p395_p7 }
  0x44   : > { %566 = dma.done.wait (%p396_p8), %s278_s28, 16  }
  0x45   : > { %568 = vsyncadd (%p396_p8), %s278_s28, 4294967280  ;;  %s287_s3 = scalar_lea.sflag [#allocation7], %s277_s7 }
  0x46   : > { %570 = dma.done.wait (%p396_p8), %s287_s3, 16  }
  0x47   : > { %572 = vsyncadd (%p396_p8), %s287_s3, 4294967280  ;;  %s22_s14 = sadd.s32 1, %s595_s14   ;;  %s771_s9 = smov %s579_s10 }
  0x48   : > { %p19_p10 = scmp.ge.s32.totalorder %s22_s14, 4   ;;  %s772_s10 = smov %s583_s11 }
  0x49   : > { %s773_s11 = smov %s668_s23  ;;  %s774_s12 = smov %s591_s13 }
  0x4a   : > { %s775_s13 = smov %s777_s17  ;;  %21 = sbr.rel (!%p19_p10) target bundleno = 8 (0x8), region = 94 }
  0x4f   :  { %292 = vsyncpa [#allocation3], 1 }
  0x50   :  { %294 = vsyncpa [#allocation3 + $0x1], 1 }
  0x51   :  { %295 = vsyncpa [#allocation4], 1 }
  0x52   :  { %297 = vsyncpa [#allocation4 + $0x1], 1 }
  0x53   :  { %298 = vsyncpa [#allocation7], 1 }
  0x54   :  { %300 = vsyncpa [#allocation7 + $0x1], 1 }

</bundles_post_ra>
